<compile_context>
chip_gen: v7x
topology: tpu7x:2x2x1
jax: 0.10.0
libtpu: 0.0.40
codegen_flags: <defaults>
</compile_context>

<pallas_src>
import functools

import jax
import jax.numpy as jnp
import numpy as np
from jax.experimental import pallas as pl

HIDDEN = 32
NUM_HEADS = 4
HEAD_DIM = HIDDEN // NUM_HEADS            # 8
NUM_CHUNKS = HIDDEN // HEAD_DIM           # 4 lane chunks of width HEAD_DIM per row
BATCH = 2
SEQ = 8
DROPOUT_P = 0.0                           # nn.Dropout(0.0) == identity


# ----------------------------- kernel ----------------------------------------

def _fused_self_attention_kernel(B, S, has_bias, *refs):
    """Fused QKV -> all-heads attention -> output projection in one pass.

    refs = (x, wqkv, bqkv, wo, bo, maskval, [q_addend], out, probs)
    """
    x_ref, wqkv_ref, bqkv_ref, wo_ref, bo_ref, maskv_ref = refs[:6]
    idx = 6
    qadd_ref = None
    if has_bias:
        qadd_ref = refs[idx]
        idx += 1
    out_ref, p_ref = refs[idx], refs[idx + 1]

    H, D, NC = HIDDEN, HEAD_DIM, NUM_CHUNKS
    BS = B * S

    # ---- fused QKV projection: one MXU pass (BS, H) x (H, 3H) ---------------
    # 1/sqrt(head_dim) is folded into the q columns of wqkv/bqkv at fuse time.
    x = x_ref[...]
    qkv = jnp.dot(x, wqkv_ref[...], preferred_element_type=jnp.float32) + bqkv_ref[...]
    q2d = qkv[:, 0:H]
    if has_bias:
        # reference: q = linear_q(x) + linear_q(bias); the bias-side projection
        # scale*(bias @ Wq + bq) is precomputed outside the kernel.
        q2d = q2d + qadd_ref[...]
    k2d = qkv[:, H:2 * H]
    v2d = qkv[:, 2 * H:3 * H]

    # ---- head-stacked (NC*BS, D) values (no VMEM scratch round-trip) --------
    # Row j*BS + r == activation row r, lane chunk j. Reproduces torch's
    # token-mixing .view(B, NH, S, D): each head = one activation-row pair
    # across all NC chunks.
    qc = jnp.concatenate([q2d[:, j * D:(j + 1) * D] for j in range(NC)], axis=0)
    kc = jnp.concatenate([k2d[:, j * D:(j + 1) * D] for j in range(NC)], axis=0)
    vc = jnp.concatenate([v2d[:, j * D:(j + 1) * D] for j in range(NC)], axis=0)

    # ---- all heads in one scores matmul (contract D, no explicit K transpose)
    scores = jax.lax.dot_general(qc, kc, (((1,), (1,)), ((), ())),
                                 preferred_element_type=jnp.float32)    # (N, N)

    # ---- single select: combined structural(+user) fill mask from the wrapper
    #   0.0   -> keep score
    #   -1e9  -> user-masked position (exact masked_fill value)
    #   -1e30 -> cross-head entry of the stacked layout (underflows to 0)
    maskv = maskv_ref[...]
    scores = jnp.where(maskv == 0.0, scores, maskv)

    # ---- softmax per row (exact division so returned weights sum to 1) ------
    m = jnp.max(scores, axis=-1, keepdims=True)
    e = jnp.exp(scores - m)
    p = e / jnp.sum(e, axis=-1, keepdims=True)
    p_ref[...] = p                                     # dropout(p=0.0) == identity

    # ---- PV, inverse restack (lane concat), ONE output projection matmul ----
    attn_c = jnp.dot(p, vc, preferred_element_type=jnp.float32)         # (N, D)
    attn2d = jnp.concatenate(
        [attn_c[j * BS:(j + 1) * BS, :] for j in range(NC)], axis=1)    # (BS, H)
    out_ref[...] = (jnp.dot(attn2d, wo_ref[...], preferred_element_type=jnp.float32)
                    + bo_ref[...])


# ----------------------------- wrappers ---------------------------------------

def _full_spec(shape):
    # full-array block on a trivial grid=(1,)
    return pl.BlockSpec(shape, lambda i: (0,) * len(shape))


def _head_row_index(B, S):
    """rC[b, h, s] = row of the (NC*B*S, D) head-stacked layout holding (b, h, s)."""
    b = jnp.arange(B).reshape(B, 1, 1)
    h = jnp.arange(NUM_HEADS).reshape(1, NUM_HEADS, 1)
    s = jnp.arange(S).reshape(1, 1, S)
    u = h * S + s
    return (u % NUM_CHUNKS) * (B * S) + b * S + u // NUM_CHUNKS       # (B, NH, S)


def _structural_fill_mask(B, S):
    """(N, N) f32: 0 where two stacked rows share a (batch, head), else -1e30."""
    BS = B * S
    N = NUM_CHUNKS * BS
    rph = (S * HEAD_DIM) // HIDDEN                 # activation rows spanned per head
    grp = (np.arange(N) % BS) // rph
    same = grp[:, None] == grp[None, :]
    return np.where(same, 0.0, -1e30).astype(np.float32)


def fuse_params(params):
    """Fold Wq|Wk|Wv -> (H, 3H), biases -> (1, 3H); fold 1/sqrt(D) into the q part."""
    scale = float(HEAD_DIM) ** -0.5
    return {
        "wqkv": jnp.concatenate([params["wq"] * scale, params["wk"], params["wv"]], axis=1),
        "bqkv": jnp.concatenate([params["bq"] * scale, params["bk"], params["bv"]], axis=1),
        "wo": params["wo"],
        "bo": params["bo"],
    }


def self_attention_forward(fused, x, bias=None, mask=None):
    """Mirrors SelfAttention.forward.  Returns (attn_output, attn_weights)."""
    B, S, H = x.shape
    assert H == HIDDEN and (S * HEAD_DIM) % HIDDEN == 0, "unsupported shape"
    BS, N = B * S, NUM_CHUNKS * B * S
    has_bias = bias is not None

    rC = _head_row_index(B, S)                                        # (B, NH, S)

    # combined fill mask (structural + optional user mask) built once, outside
    # the hot kernel -> the kernel does a single where() and zero iota/mod work.
    maskval = jnp.asarray(_structural_fill_mask(B, S))
    if mask is not None:
        mask_b = jnp.broadcast_to(mask, (B, NUM_HEADS, S, S))
        fill = jnp.where(mask_b == 0, jnp.float32(-1e9), jnp.float32(0.0))
        maskval = maskval.at[rC[..., :, None], rC[..., None, :]].set(fill)

    inputs = [x.reshape(BS, H), fused["wqkv"], fused["bqkv"], fused["wo"],
              fused["bo"], maskval]
    in_specs = [_full_spec((BS, H)), _full_spec((H, 3 * H)), _full_spec((1, 3 * H)),
                _full_spec((H, H)), _full_spec((1, H)), _full_spec((N, N))]
    if has_bias:
        # scale*(bias @ Wq + bq): one-time XLA glue, keeps the extra projection
        # off the kernel's critical path (wqkv q-columns already carry the scale).
        qadd = jnp.dot(bias.reshape(BS, H), fused["wqkv"][:, 0:H]) + fused["bqkv"][:, 0:H]
        inputs.append(qadd)
        in_specs.append(_full_spec((BS, H)))

    out2d, probs = pl.pallas_call(
        functools.partial(_fused_self_attention_kernel, B, S, has_bias),
        grid=(1,),
        out_shape=[jax.ShapeDtypeStruct((BS, H), jnp.float32),
                   jax.ShapeDtypeStruct((N, N), jnp.float32)],
        in_specs=in_specs,
        out_specs=[_full_spec((BS, H)), _full_spec((N, N))],
    )(*inputs)

    # gather the (B, NH, S, S) attention weights out of the head-stacked probs (XLA glue)
    attn_w = probs[rC[..., :, None], rC[..., None, :]]
    return out2d.reshape(B, S, H), attn_w


# ----------------------------- reference & init --------------------------------

def init_params(key, hidden):
    ks = jax.random.split(key, 8)
    s = 0.05
    return {
        "wq": s * jax.random.normal(ks[0], (hidden, hidden), jnp.float32),
        "wk": s * jax.random.normal(ks[1], (hidden, hidden), jnp.float32),
        "wv": s * jax.random.normal(ks[2], (hidden, hidden), jnp.float32),
        "wo": s * jax.random.normal(ks[3], (hidden, hidden), jnp.float32),
        "bq": s * jax.random.normal(ks[4], (1, hidden), jnp.float32),
        "bk": s * jax.random.normal(ks[5], (1, hidden), jnp.float32),
        "bv": s * jax.random.normal(ks[6], (1, hidden), jnp.float32),
        "bo": s * jax.random.normal(ks[7], (1, hidden), jnp.float32),
    }


def reference_forward(params, x, bias=None, mask=None):
    """Pure-jnp mirror of the PyTorch module (row-major .view semantics)."""
    B, S, H = x.shape
    lin = lambda v, w, b: jnp.dot(v, w) + b
    k = lin(x, params["wk"], params["bk"])
    q = lin(x, params["wq"], params["bq"])
    if bias is not None:
        q = q + lin(bias, params["wq"], params["bq"])
    v = lin(x, params["wv"], params["bv"])
    qh = q.reshape(B, NUM_HEADS, S, HEAD_DIM)
    kh = k.reshape(B, NUM_HEADS, S, HEAD_DIM)
    vh = v.reshape(B, NUM_HEADS, S, HEAD_DIM)
    scores = jnp.einsum("bhqd,bhkd->bhqk", qh, kh) / jnp.sqrt(jnp.float32(HEAD_DIM))
    if mask is not None:
        scores = jnp.where(mask == 0, jnp.float32(-1e9), scores)
    w = jax.nn.softmax(scores, axis=-1)
    attn = jnp.einsum("bhqk,bhkd->bhqd", w, vh).reshape(B, S, H)
    return lin(attn, params["wo"], params["bo"]), w


# ----------------------------- main --------------------------------------------

if __name__ == "__main__":
    x = jax.random.normal(jax.random.PRNGKey(0), (BATCH, SEQ, HIDDEN), jnp.float32)
    params = init_params(jax.random.PRNGKey(42), HIDDEN)
    fused = fuse_params(params)

    # --- plain path (bias=None, mask=None) ------------------------------------
    out, attn_w = self_attention_forward(fused, x)
    out = jax.block_until_ready(out)
    attn_w = jax.block_until_ready(attn_w)
    assert out.shape == (BATCH, SEQ, HIDDEN)
    assert attn_w.shape == (BATCH, NUM_HEADS, SEQ, SEQ)
    # exact-division softmax -> rows sum to 1 to fp32 accuracy
    assert jnp.allclose(jnp.sum(attn_w, axis=-1), 1.0, atol=1e-3)
    ref_out, ref_w = reference_forward(params, x)
    assert jnp.allclose(out, ref_out, atol=1e-2)
    assert jnp.allclose(attn_w, ref_w, atol=1e-2)

    # --- bias + mask path ------------------------------------------------------
    bias = 0.1 * jax.random.normal(jax.random.PRNGKey(1), (BATCH, SEQ, HIDDEN), jnp.float32)
    mask = (jax.random.uniform(jax.random.PRNGKey(2), (BATCH, 1, SEQ, SEQ)) > 0.25
            ).astype(jnp.float32)
    out_b, attn_w_b = self_attention_forward(fused, x, bias=bias, mask=mask)
    out_b = jax.block_until_ready(out_b)
    attn_w_b = jax.block_until_ready(attn_w_b)
    ref_out_b, ref_w_b = reference_forward(params, x, bias=bias, mask=mask)
    assert jnp.allclose(out_b, ref_out_b, atol=1e-2)
    assert jnp.allclose(attn_w_b, ref_w_b, atol=1e-2)

    print("KERNEL_OK")
</pallas_src>

<mosaic_0001>
module attributes {stable_mosaic.version = 11 : i64} {
  func.func @_fused_self_attention_kernel(%arg0: i32, %arg1: memref<16x32xf32, #tpu.memory_space<vmem>>, %arg2: memref<32x96xf32, #tpu.memory_space<vmem>>, %arg3: memref<1x96xf32, #tpu.memory_space<vmem>>, %arg4: memref<32x32xf32, #tpu.memory_space<vmem>>, %arg5: memref<1x32xf32, #tpu.memory_space<vmem>>, %arg6: memref<64x64xf32, #tpu.memory_space<vmem>>, %arg7: memref<16x32xf32, #tpu.memory_space<vmem>>, %arg8: memref<64x64xf32, #tpu.memory_space<vmem>>) attributes {dimension_semantics = [#tpu.dimension_semantics<arbitrary>], iteration_bounds = array<i64: 1>, scalar_prefetch = 0 : i64, scratch_operands = 0 : i64, tpu.core_type = #tpu.core_type<tc>, window_params = [{pipeline_mode = #tpu.pipeline_mode<synchronous>, transform_indices = @transform_0, window_bounds = array<i64: 16, 32>}, {pipeline_mode = #tpu.pipeline_mode<synchronous>, transform_indices = @transform_1, window_bounds = array<i64: 32, 96>}, {pipeline_mode = #tpu.pipeline_mode<synchronous>, transform_indices = @transform_2, window_bounds = array<i64: 1, 96>}, {pipeline_mode = #tpu.pipeline_mode<synchronous>, transform_indices = @transform_3, window_bounds = array<i64: 32, 32>}, {pipeline_mode = #tpu.pipeline_mode<synchronous>, transform_indices = @transform_4, window_bounds = array<i64: 1, 32>}, {pipeline_mode = #tpu.pipeline_mode<synchronous>, transform_indices = @transform_5, window_bounds = array<i64: 64, 64>}, {pipeline_mode = #tpu.pipeline_mode<synchronous>, transform_indices = @transform_6, window_bounds = array<i64: 16, 32>}, {pipeline_mode = #tpu.pipeline_mode<synchronous>, transform_indices = @transform_7, window_bounds = array<i64: 64, 64>}]} {
    %c0 = arith.constant 0 : index
    %c0_0 = arith.constant 0 : index
    %0 = vector.load %arg1[%c0, %c0_0] : memref<16x32xf32, #tpu.memory_space<vmem>>, vector<16x32xf32>
    %c0_1 = arith.constant 0 : index
    %c0_2 = arith.constant 0 : index
    %1 = vector.load %arg2[%c0_1, %c0_2] : memref<32x96xf32, #tpu.memory_space<vmem>>, vector<32x96xf32>
    %cst = arith.constant dense<0.000000e+00> : vector<16x96xf32>
    %2 = tpu.matmul %0, %1, %cst {dimension_numbers = #tpu.dot_dimension_numbers<[1], [0], [0], [1], [0, 0, 1, 1], [], []>} : vector<16x32xf32>, vector<32x96xf32>, vector<16x96xf32> -> vector<16x96xf32>
    %c0_3 = arith.constant 0 : index
    %c0_4 = arith.constant 0 : index
    %3 = vector.load %arg3[%c0_3, %c0_4] : memref<1x96xf32, #tpu.memory_space<vmem>>, vector<1x96xf32>
    %4 = vector.broadcast %3 : vector<1x96xf32> to vector<16x96xf32>
    %5 = arith.addf %2, %4 : vector<16x96xf32>
    %6 = vector.extract_strided_slice %5 {offsets = [0, 0], sizes = [16, 32], strides = [1, 1]} : vector<16x96xf32> to vector<16x32xf32>
    %7 = vector.extract_strided_slice %5 {offsets = [0, 32], sizes = [16, 32], strides = [1, 1]} : vector<16x96xf32> to vector<16x32xf32>
    %8 = vector.extract_strided_slice %5 {offsets = [0, 64], sizes = [16, 32], strides = [1, 1]} : vector<16x96xf32> to vector<16x32xf32>
    %9 = vector.extract_strided_slice %6 {offsets = [0, 0], sizes = [16, 8], strides = [1, 1]} : vector<16x32xf32> to vector<16x8xf32>
    %10 = vector.extract_strided_slice %6 {offsets = [0, 8], sizes = [16, 8], strides = [1, 1]} : vector<16x32xf32> to vector<16x8xf32>
    %11 = vector.extract_strided_slice %6 {offsets = [0, 16], sizes = [16, 8], strides = [1, 1]} : vector<16x32xf32> to vector<16x8xf32>
    %12 = vector.extract_strided_slice %6 {offsets = [0, 24], sizes = [16, 8], strides = [1, 1]} : vector<16x32xf32> to vector<16x8xf32>
    %13 = tpu.concatenate %9, %10, %11, %12 in 0 : vector<16x8xf32>, vector<16x8xf32>, vector<16x8xf32>, vector<16x8xf32> -> vector<64x8xf32>
    %14 = vector.extract_strided_slice %7 {offsets = [0, 0], sizes = [16, 8], strides = [1, 1]} : vector<16x32xf32> to vector<16x8xf32>
    %15 = vector.extract_strided_slice %7 {offsets = [0, 8], sizes = [16, 8], strides = [1, 1]} : vector<16x32xf32> to vector<16x8xf32>
    %16 = vector.extract_strided_slice %7 {offsets = [0, 16], sizes = [16, 8], strides = [1, 1]} : vector<16x32xf32> to vector<16x8xf32>
    %17 = vector.extract_strided_slice %7 {offsets = [0, 24], sizes = [16, 8], strides = [1, 1]} : vector<16x32xf32> to vector<16x8xf32>
    %18 = tpu.concatenate %14, %15, %16, %17 in 0 : vector<16x8xf32>, vector<16x8xf32>, vector<16x8xf32>, vector<16x8xf32> -> vector<64x8xf32>
    %19 = vector.extract_strided_slice %8 {offsets = [0, 0], sizes = [16, 8], strides = [1, 1]} : vector<16x32xf32> to vector<16x8xf32>
    %20 = vector.extract_strided_slice %8 {offsets = [0, 8], sizes = [16, 8], strides = [1, 1]} : vector<16x32xf32> to vector<16x8xf32>
    %21 = vector.extract_strided_slice %8 {offsets = [0, 16], sizes = [16, 8], strides = [1, 1]} : vector<16x32xf32> to vector<16x8xf32>
    %22 = vector.extract_strided_slice %8 {offsets = [0, 24], sizes = [16, 8], strides = [1, 1]} : vector<16x32xf32> to vector<16x8xf32>
    %23 = tpu.concatenate %19, %20, %21, %22 in 0 : vector<16x8xf32>, vector<16x8xf32>, vector<16x8xf32>, vector<16x8xf32> -> vector<64x8xf32>
    %cst_5 = arith.constant dense<0.000000e+00> : vector<64x64xf32>
    %24 = tpu.matmul %13, %18, %cst_5 {dimension_numbers = #tpu.dot_dimension_numbers<[1], [1], [0], [0], [0, 0, 1, 0], [], []>} : vector<64x8xf32>, vector<64x8xf32>, vector<64x64xf32> -> vector<64x64xf32>
    %c0_6 = arith.constant 0 : index
    %c0_7 = arith.constant 0 : index
    %25 = vector.load %arg6[%c0_6, %c0_7] : memref<64x64xf32, #tpu.memory_space<vmem>>, vector<64x64xf32>
    %cst_8 = arith.constant 0.000000e+00 : f32
    %26 = vector.broadcast %cst_8 : f32 to vector<64x64xf32>
    %27 = arith.cmpf oeq, %25, %26 : vector<64x64xf32>
    %28 = arith.select %27, %24, %25 : vector<64x64xi1>, vector<64x64xf32>
    %cst_9 = arith.constant dense<0xFF800000> : vector<64xf32>
    %29 = vector.multi_reduction <maximumf>, %28, %cst_9 [1] : vector<64x64xf32> to vector<64xf32>
    %30 = vector.shape_cast %29 : vector<64xf32> to vector<64x1xf32>
    %31 = vector.broadcast %30 : vector<64x1xf32> to vector<64x64xf32>
    %32 = arith.subf %28, %31 : vector<64x64xf32>
    %33 = math.exp %32 : vector<64x64xf32>
    %cst_10 = arith.constant dense<0.000000e+00> : vector<64xf32>
    %34 = vector.multi_reduction <add>, %33, %cst_10 [1] : vector<64x64xf32> to vector<64xf32>
    %35 = vector.shape_cast %34 : vector<64xf32> to vector<64x1xf32>
    %36 = vector.broadcast %35 : vector<64x1xf32> to vector<64x64xf32>
    %37 = arith.divf %33, %36 : vector<64x64xf32>
    %c0_11 = arith.constant 0 : index
    %c0_12 = arith.constant 0 : index
    %38 = vector.load %arg8[%c0_11, %c0_12] : memref<64x64xf32, #tpu.memory_space<vmem>>, vector<64x64xf32>
    tpu.vector_store %arg8[%c0_11, %c0_12], %37 {strides = array<i32>} : memref<64x64xf32, #tpu.memory_space<vmem>>, vector<64x64xf32>,
    %cst_13 = arith.constant dense<0.000000e+00> : vector<64x8xf32>
    %39 = tpu.matmul %37, %23, %cst_13 {dimension_numbers = #tpu.dot_dimension_numbers<[1], [0], [0], [1], [0, 0, 1, 1], [], []>} : vector<64x64xf32>, vector<64x8xf32>, vector<64x8xf32> -> vector<64x8xf32>
    %40 = vector.extract_strided_slice %39 {offsets = [0, 0], sizes = [16, 8], strides = [1, 1]} : vector<64x8xf32> to vector<16x8xf32>
    %41 = vector.extract_strided_slice %39 {offsets = [16, 0], sizes = [16, 8], strides = [1, 1]} : vector<64x8xf32> to vector<16x8xf32>
    %42 = vector.extract_strided_slice %39 {offsets = [32, 0], sizes = [16, 8], strides = [1, 1]} : vector<64x8xf32> to vector<16x8xf32>
    %43 = vector.extract_strided_slice %39 {offsets = [48, 0], sizes = [16, 8], strides = [1, 1]} : vector<64x8xf32> to vector<16x8xf32>
    %44 = tpu.concatenate %40, %41, %42, %43 in 1 : vector<16x8xf32>, vector<16x8xf32>, vector<16x8xf32>, vector<16x8xf32> -> vector<16x32xf32>
    %c0_14 = arith.constant 0 : index
    %c0_15 = arith.constant 0 : index
    %45 = vector.load %arg4[%c0_14, %c0_15] : memref<32x32xf32, #tpu.memory_space<vmem>>, vector<32x32xf32>
    %cst_16 = arith.constant dense<0.000000e+00> : vector<16x32xf32>
    %46 = tpu.matmul %44, %45, %cst_16 {dimension_numbers = #tpu.dot_dimension_numbers<[1], [0], [0], [1], [0, 0, 1, 1], [], []>} : vector<16x32xf32>, vector<32x32xf32>, vector<16x32xf32> -> vector<16x32xf32>
    %c0_17 = arith.constant 0 : index
    %c0_18 = arith.constant 0 : index
    %47 = vector.load %arg5[%c0_17, %c0_18] : memref<1x32xf32, #tpu.memory_space<vmem>>, vector<1x32xf32>
    %48 = vector.broadcast %47 : vector<1x32xf32> to vector<16x32xf32>
    %49 = arith.addf %46, %48 : vector<16x32xf32>
    %c0_19 = arith.constant 0 : index
    %c0_20 = arith.constant 0 : index
    %50 = vector.load %arg7[%c0_19, %c0_20] : memref<16x32xf32, #tpu.memory_space<vmem>>, vector<16x32xf32>
    tpu.vector_store %arg7[%c0_19, %c0_20], %49 {strides = array<i32>} : memref<16x32xf32, #tpu.memory_space<vmem>>, vector<16x32xf32>,
    return
  }
  func.func @transform_0(%arg0: i32) -> (i32, i32) {
    %c0_i32 = arith.constant 0 : i32
    %c0_i32_0 = arith.constant 0 : i32
    %c0_i32_1 = arith.constant 0 : i32
    return %c0_i32, %c0_i32_0 : i32, i32
  }
  func.func @transform_1(%arg0: i32) -> (i32, i32) {
    %c0_i32 = arith.constant 0 : i32
    %c0_i32_0 = arith.constant 0 : i32
    %c0_i32_1 = arith.constant 0 : i32
    return %c0_i32, %c0_i32_0 : i32, i32
  }
  func.func @transform_2(%arg0: i32) -> (i32, i32) {
    %c0_i32 = arith.constant 0 : i32
    %c0_i32_0 = arith.constant 0 : i32
    %c0_i32_1 = arith.constant 0 : i32
    return %c0_i32, %c0_i32_0 : i32, i32
  }
  func.func @transform_3(%arg0: i32) -> (i32, i32) {
    %c0_i32 = arith.constant 0 : i32
    %c0_i32_0 = arith.constant 0 : i32
    %c0_i32_1 = arith.constant 0 : i32
    return %c0_i32, %c0_i32_0 : i32, i32
  }
  func.func @transform_4(%arg0: i32) -> (i32, i32) {
    %c0_i32 = arith.constant 0 : i32
    %c0_i32_0 = arith.constant 0 : i32
    %c0_i32_1 = arith.constant 0 : i32
    return %c0_i32, %c0_i32_0 : i32, i32
  }
  func.func @transform_5(%arg0: i32) -> (i32, i32) {
    %c0_i32 = arith.constant 0 : i32
    %c0_i32_0 = arith.constant 0 : i32
    %c0_i32_1 = arith.constant 0 : i32
    return %c0_i32, %c0_i32_0 : i32, i32
  }
  func.func @transform_6(%arg0: i32) -> (i32, i32) {
    %c0_i32 = arith.constant 0 : i32
    %c0_i32_0 = arith.constant 0 : i32
    %c0_i32_1 = arith.constant 0 : i32
    return %c0_i32, %c0_i32_0 : i32, i32
  }
  func.func @transform_7(%arg0: i32) -> (i32, i32) {
    %c0_i32 = arith.constant 0 : i32
    %c0_i32_0 = arith.constant 0 : i32
    %c0_i32_1 = arith.constant 0 : i32
    return %c0_i32, %c0_i32_0 : i32, i32
  }
}

</mosaic_0001>

<bundles_post_ra>
// kernel: tpu_custom_call.1
= control target key start
LH: loop header
LB: loop body
LE: loop exit
PB: predicated region body
PF: predicated region fallthrough
CT: control target
= control target key end

     0   :  { %13 = vsyncpa [#allocation3], 0  ;;  %s1474_s0 = inlined_call_operand.hbm [shape: f32[16,32], index: 0, kind: input, shape index: {}]   ;;  %s1475_s1 = inlined_call_operand.hbm [shape: f32[32,96], index: 1, kind: input, shape index: {}]   ;;  %s1476_s2 = inlined_call_operand.vmem [shape: f32[1,96], index: 2, kind: input, shape index: {}]   ;;  %s1477_s3 = inlined_call_operand.hbm [shape: f32[32,32], index: 3, kind: input, shape index: {}]   ;;  %s1478_s4 = inlined_call_operand.vmem [shape: f32[1,32], index: 4, kind: input, shape index: {}]   ;;  %s1479_s5 = inlined_call_operand.hbm [shape: f32[64,64], index: 5, kind: input, shape index: {}]   ;;  %s1480_s6 = inlined_call_operand.hbm [shape: f32[16,32], index: 6, kind: output, shape index: {0}]   ;;  %s1481_s7 = inlined_call_operand.hbm [shape: f32[64,64], index: 7, kind: output, shape index: {1}]  }
   0x1   :  { %14 = vsyncpa [#allocation6], 0 }
   0x2   :  { %15 = vsyncpa [#allocation9], 0 }
   0x3   :  { %16 = vsyncpa [#allocation4], 0 }
   0x4   :  { %17 = vsyncpa [#allocation12], 0  ;;  %s1217_s24 = smov [#allocation5]   ;;  %s1218_s26 = smov [#allocation2]  }
   0x5   :  { %s35_s25 = sshll.u32 %s1217_s24, 4  ;;  %s23_s27 = sshll.u32 %s1218_s26, 4  ;;  %s36_s25 = int_to_ptr.vmem [resolvable:$true] %s35_s25  ;;  %s1272_s27 = int_to_ptr.vmem [resolvable:$true] %s23_s27 }
   0x6   :  { %s1075_s30 = scalar_lea.hbm %s1475_s1, 512 }
   0x7   :  { %p1076_p0 = scmp.ne.s32.totalorder %s1475_s1, %s1075_s30  ;;  %p1079_p1 = scmp.lt.u32.totalorder %s1075_s30, %s1475_s1 }
   0x9   :  { %p1081_p2 = pnand %p1079_p1, %p1076_p0 }
   0xb   :  { %1084 = shalt.err (!%p1081_p2)
}
   0xc   :  { %s1085_s12 = scalar_lea.vmem %s36_s25, 512  ;;  %p1090_p4 = scmp.lt.s32.totalorder %s36_s25, %s36_s25 }
   0xd   :  { %p1086_p3 = scmp.ne.s32.totalorder %s36_s25, %s1085_s12  ;;  %p1091_p5 = scmp.lt.s32.totalorder %s1085_s12, %s1085_s12 }
   0xf   :  { %p1092_p6 = por %p1091_p5, %p1090_p4 }
  0x11   :  { %p1093_p7 = pnand %p1092_p6, %p1086_p3 }
  0x13   :  { %1096 = shalt.err (!%p1093_p7)
}
  0x14   :  { %s1219_s13 = smov 128   ;;  %s1220_s14 = smov 8  }
  0x15   :  { %41 = dma.hbm_to_vmem [thread:$0]  %s1475_s1, 512, %s36_s25, [#allocation6], %s1219_s13, %s1219_s13, %s1220_s14  }
  0x16   :  { %s1097_s19 = scalar_lea.hbm %s1474_s0, 256 }
  0x17   :  { %p1098_p8 = scmp.ne.s32.totalorder %s1474_s0, %s1097_s19  ;;  %p1101_p9 = scmp.lt.u32.totalorder %s1097_s19, %s1474_s0 }
  0x19   :  { %p1103_p10 = pnand %p1101_p9, %p1098_p8 }
  0x1b   :  { %1106 = shalt.err (!%p1103_p10)
}
  0x1c   :  { %s1107_s24 = scalar_lea.vmem %s1272_s27, 256  ;;  %p1112_p12 = scmp.lt.s32.totalorder %s1272_s27, %s1272_s27 }
  0x1d   :  { %p1108_p11 = scmp.ne.s32.totalorder %s1272_s27, %s1107_s24  ;;  %p1113_p13 = scmp.lt.s32.totalorder %s1107_s24, %s1107_s24 }
  0x1f   :  { %p1114_p0 = por %p1113_p13, %p1112_p12 }
  0x21   :  { %p1115_p1 = pnand %p1114_p0, %p1108_p11 }
  0x23   :  { %1118 = shalt.err (!%p1115_p1)
}
  0x24   :  { %29 = dma.hbm_to_vmem [thread:$0]  %s1474_s0, 256, %s1272_s27, [#allocation3], %s1219_s13, %s1219_s13, %s1220_s14  }
  0x25   :  { %s1221_s26 = smov [#allocation7]   ;;  %s1222_s29 = smov [#allocation8]  }
  0x26   :  { %s49_s28 = sshll.u32 %s1221_s26, 4  ;;  %s63_s30 = sshll.u32 %s1222_s29, 4  ;;  %s50_s28 = int_to_ptr.vmem [resolvable:$true] %s49_s28  ;;  %s1309_s30 = int_to_ptr.vmem [resolvable:$true] %s63_s30 }
  0x27   :  { %s1119_s10 = scalar_lea.hbm %s1477_s3, 512 }
  0x28   :  { %p1120_p2 = scmp.ne.s32.totalorder %s1477_s3, %s1119_s10  ;;  %p1123_p3 = scmp.lt.u32.totalorder %s1119_s10, %s1477_s3 }
  0x2a   :  { %p1125_p4 = pnand %p1123_p3, %p1120_p2 }
  0x2c   :  { %1128 = shalt.err (!%p1125_p4)
}
  0x2d   :  { %s1129_s0 = scalar_lea.vmem %s50_s28, 512  ;;  %p1134_p6 = scmp.lt.s32.totalorder %s50_s28, %s50_s28 }
  0x2e   :  { %p1130_p5 = scmp.ne.s32.totalorder %s50_s28, %s1129_s0  ;;  %p1135_p7 = scmp.lt.s32.totalorder %s1129_s0, %s1129_s0 }
  0x30   :  { %p1136_p8 = por %p1135_p7, %p1134_p6 }
  0x32   :  { %p1137_p9 = pnand %p1136_p8, %p1130_p5 }
  0x34   :  { %1140 = shalt.err (!%p1137_p9)
}
  0x35   :  { %55 = dma.hbm_to_vmem [thread:$0]  %s1477_s3, 512, %s50_s28, [#allocation6], %s1219_s13, %s1219_s13, %s1220_s14  }
  0x36   :  { %s1141_s20 = scalar_lea.hbm %s1479_s5, 1024 }
  0x37   :  { %p1142_p10 = scmp.ne.s32.totalorder %s1479_s5, %s1141_s20  ;;  %p1145_p11 = scmp.lt.u32.totalorder %s1141_s20, %s1479_s5 }
  0x39   :  { %p1147_p12 = pnand %p1145_p11, %p1142_p10 }
  0x3b   :  { %1150 = shalt.err (!%p1147_p12)
}
  0x3c   :  { %s1151_s1 = scalar_lea.vmem %s1309_s30, 1024  ;;  %p1156_p0 = scmp.lt.s32.totalorder %s1309_s30, %s1309_s30 }
  0x3d   :  { %p1152_p13 = scmp.ne.s32.totalorder %s1309_s30, %s1151_s1  ;;  %p1157_p1 = scmp.lt.s32.totalorder %s1151_s1, %s1151_s1 }
  0x3f   :  { %p1158_p2 = por %p1157_p1, %p1156_p0 }
  0x41   :  { %p1159_p3 = pnand %p1158_p2, %p1152_p13 }
  0x43   :  { %1162 = shalt.err (!%p1159_p3)
}
  0x44   :  { %69 = dma.hbm_to_vmem [thread:$0]  %s1479_s5, 1024, %s1309_s30, [#allocation9], %s1219_s13, %s1219_s13, %s1220_s14  }
  0x45   :  { %1207 = dma.done.wait [#allocation3], 256  }
  0x46   :  { %1208 = vsyncadd [#allocation3], 4294967040 }
  0x47   :  { %1209 = dma.done.wait [#allocation6], 1024  }
  0x48   :  { %1210 = vsyncadd [#allocation6], 4294966272 }
  0x49   :  { %1211 = dma.done.wait [#allocation9], 1024  }
  0x4a   :  { %1212 = vsyncadd [#allocation9], 4294966272  ;;  %vm95_vm0 = vcmask 261120   ;;  %v84_v0 = vld [vmem:[#allocation5] sm:$0xff]  ;;  %v85_v1 = vld [vmem:[#allocation5 + $0x8] sm:$0xff]  ;;  %vm207_vm1 = vcmask 64512  }
  0x4b   :  { %v86_v2 = vld [vmem:[#allocation5 + $0x10] sm:$0xff]  ;;  %v932_v3 = vpack.c.bf16 %v85_v1, %v84_v0  ;;  %v87_v4 = vld [vmem:[#allocation5 + $0x18] sm:$0xff]  ;;  %s1223_s28 = smov 112   ;;  %s1224_s29 = smov 120   ;;  %vm1366_vm2 = vmpackc.low %vm207_vm1, %vm207_vm1  ;;  %vm369_vm4 = vcmask 523264   ;;  %vm645_vm12 = vcmask 130048  }
  0x4c   :  { %v82_v5 = vld [vmem:[#allocation2] sm:$0xff]  ;;  %v936_v6 = vpack.c.bf16 %v87_v4, %v86_v2  ;;  %v83_v7 = vld [vmem:[#allocation2 + $0x8] sm:$0xff]  ;;  %s1225_s30 = smov 104   ;;  %s1226_s8 = smov 96   ;;  %v346_v40 = vld [vmem:[#allocation8 + $0x8] sm:$0xff]  ;;  %vm648_vm13 = vcmask 195584  }
  0x4d   :  { %862 = vmatprep.mubr.msk.f32.mxu0 %vm95_vm0, %v82_v5  ;;  %933 = vmatprep.subr.bf16.mxu0 %v932_v3  ;;  %v780_v8 = vld [vmem:[%s1476_s2] ss:$0 sm:$0xff]  ;;  %v345_v41 = vld [vmem:[#allocation8] sm:$0xff]  ;;  %vm354_vm3 = vcmp.eq.f32.partialorder %v346_v40, 0.0  ;;  %v348_v48 = vld [vmem:[#allocation8 + $0x18] sm:$0xff]  ;;  %s1227_s2 = smov 64  }
  0x4e   :  { %935 = vmatpush3.bf16.msra.mxu0 %v932_v3  ;;  %vm353_vm5 = vcmp.eq.f32.partialorder %v345_v41, 0.0  ;;  %v347_v43 = vld [vmem:[#allocation8 + $0x10] sm:$0xff]  ;;  %v349_v51 = vld [vmem:[#allocation8 + $0x20] sm:$0xff]  ;;  %vm356_vm7 = vcmp.eq.f32.partialorder %v348_v48, 0.0  ;;  %v350_v54 = vld [vmem:[#allocation8 + $0x28] sm:$0xff]  ;;  %s1228_s9 = smov 16  }
  0x4f   :  { %937 = vmatprep.subr.bf16.mxu0 %v936_v6  ;;  %vm355_vm6 = vcmp.eq.f32.partialorder %v347_v43, 0.0  ;;  %vm357_vm8 = vcmp.eq.f32.partialorder %v349_v51, 0.0  ;;  %v351_v58 = vld [vmem:[#allocation8 + $0x30] sm:$0xff]  ;;  %vm358_vm9 = vcmp.eq.f32.partialorder %v350_v54, 0.0  ;;  %v352_v61 = vld [vmem:[#allocation8 + $0x38] sm:$0xff]  ;;  %s1229_s10 = smov 24  }
  0x50   :  { %vm359_vm10 = vcmp.eq.f32.partialorder %v351_v58, 0.0  ;;  %vm360_vm11 = vcmp.eq.f32.partialorder %v352_v61, 0.0  ;;  %s1230_s11 = smov [#allocation11]  }
  0x51   :  { %s762_s12 = sshll.u32 %s1230_s11, 4  ;;  %s763_s12 = int_to_ptr.vmem [resolvable:$true] %s762_s12 }
  0x52   :  { %939 = vmatpush3.bf16.msra.mxu0 %v936_v6  ;;  %s1163_s15 = scalar_lea.vmem %s763_s12, 1024  ;;  %p1168_p5 = scmp.lt.s32.totalorder %s763_s12, %s763_s12 }
  0x53   :  { %p1164_p4 = scmp.ne.s32.totalorder %s763_s12, %s1163_s15  ;;  %p1169_p6 = scmp.lt.s32.totalorder %s1163_s15, %s1163_s15 }
  0x55   :  { %863 = vmatmul.mubr.msk.f32.vlgmr.msra.gmra.mrb[0].mxu0 %vm95_vm0, %v83_v7  ;;  %p1170_p7 = por %p1169_p6, %p1168_p5 }
  0x57   :  { %p1171_p8 = pnand %p1170_p7, %p1164_p4 }
 0x128   :  { %v864_v9 = vpop.f32.mrb[0].mxu0 }
 0x129   :  { %v168_v10 = vpop.f32.mrb[1].mxu0  ;;  %v174_v12 = vadd.f32 %v864_v9, %v780_v8 }
 0x12a   :  { %v169_v11 = vadd.f32 %v780_v8, %v168_v10 }
 0x12c   :  { %183 = vrot.lane.b32.xlu1 %v169_v11, %s1223_s28  ;;  %179 = vrot.lane.b32.xlu0 %v169_v11, %s1224_s29  ;;  %v1352_v13 = vpack.i.bf16 %v174_v12, %v169_v11 }
 0x12d   :  { %881 = vmatprep.mubr.msk.f32.mxu1 %vm207_vm1, %v169_v11 }
 0x130   :  { %185 = vrot.lane.b32.xlu1 %v174_v12, %s1223_s28  ;;  %181 = vrot.lane.b32.xlu0 %v174_v12, %s1224_s29 }
 0x134   :  { %189 = vrot.lane.b32.xlu1 %v174_v12, %s1225_s30  ;;  %187 = vrot.lane.b32.xlu0 %v169_v11, %s1225_s30 }
 0x138   :  { %1004 = vrot.lane.b32.xlu0 %v1352_v13, %s1226_s8 }
 0x19e   :  { %v184_v14 = vpop.permute.xlu1 %183  ;;  %v180_v15 = vpop.permute.xlu0 %179 }
 0x1a2   :  { %v186_v16 = vpop.permute.xlu1 %185  ;;  %v182_v17 = vpop.permute.xlu0 %181 }
 0x1a3   :  { %v1355_v18 = vpack.i.bf16 %v186_v16, %v184_v14  ;;  %v1357_v19 = vpack.i.bf16 %v182_v17, %v180_v15 }
 0x1a5   :  { %1014 = vrot.lane.b32.xlu0 %v1355_v18, %s1226_s8  ;;  %1009 = vrot.lane.b32.xlu1 %v1357_v19, %s1226_s8 }
 0x1a6   :  { %v190_v20 = vpop.permute.xlu1 %189  ;;  %v188_v21 = vpop.permute.xlu0 %187 }
 0x1a7   :  { %v1361_v22 = vpack.i.bf16 %v190_v20, %v188_v21 }
 0x1a9   :  { %1019 = vrot.lane.b32.xlu1 %v1361_v22, %s1226_s8 }
 0x1aa   :  { %v1005_v23 = vpop.permute.xlu0 %1004 }
 0x1ab   :  { %v1007_v24 = vunpack.i.h.bf16 %v1005_v23  ;;  %v1006_v25 = vunpack.i.l.bf16 %v1005_v23 }
 0x1ad   :  { %v940_v27 = vpack.c.bf16 %v1007_v24, %v1006_v25 }
 0x1af   :  { %942 = vmatprep.subr.msk.bf16.mxu1 %vm1366_vm2, %v940_v27 }
 0x1b0   :  { %945 = vmatpush3.bf16.xpose.msk.msra.mxu1 %vm1366_vm2, %v940_v27 }
 0x217   :  { %v1010_v28 = vpop.permute.xlu1 %1009  ;;  %v1015_v29 = vpop.permute.xlu0 %1014 }
 0x218   :  { %v1012_v30 = vunpack.i.h.bf16 %v1010_v28  ;;  %v1011_v31 = vunpack.i.l.bf16 %v1010_v28  ;;  %v1017_v32 = vunpack.i.h.bf16 %v1015_v29  ;;  %v1016_v33 = vunpack.i.l.bf16 %v1015_v29 }
 0x21a   :  { %v946_v34 = vpack.c.bf16 %v1012_v30, %v1011_v31  ;;  %v952_v35 = vpack.c.bf16 %v1017_v32, %v1016_v33 }
 0x21b   :  { %v1020_v36 = vpop.permute.xlu1 %1019 }
 0x21c   :  { %948 = vmatprep.subr.msk.bf16.mxu1 %vm1366_vm2, %v946_v34  ;;  %v1022_v37 = vunpack.i.h.bf16 %v1020_v36  ;;  %v1021_v38 = vunpack.i.l.bf16 %v1020_v36 }
 0x21d   :  { %951 = vmatpush3.bf16.xpose.msk.msra.mxu1 %vm1366_vm2, %v946_v34 }
 0x21e   :  { %954 = vmatprep.subr.msk.bf16.mxu1 %vm1366_vm2, %v952_v35  ;;  %v958_v39 = vpack.c.bf16 %v1022_v37, %v1021_v38 }
 0x225   :  { %957 = vmatpush3.bf16.xpose.msk.msra.mxu1 %vm1366_vm2, %v952_v35 }
 0x226   :  { %960 = vmatprep.subr.msk.bf16.mxu1 %vm1366_vm2, %v958_v39 }
 0x22d   :  { %963 = vmatpush3.bf16.xpose.msk.msra.mxu1 %vm1366_vm2, %v958_v39 }
 0x234   :  { %882 = vmatmul.mubr.msk.f32.vlgmr.msra.gmra.mrb[0].mxu1 %vm207_vm1, %v174_v12 }
 0x235   :  { %884 = vmatprep.mubr.msk.f32.mxu1 %vm207_vm1, %v180_v15 }
 0x238   :  { %885 = vmatmul.mubr.msk.f32.gmra.mrb[2].mxu1 %vm207_vm1, %v182_v17 }
 0x239   :  { %887 = vmatprep.mubr.msk.f32.mxu1 %vm207_vm1, %v184_v14 }
 0x23c   :  { %888 = vmatmul.mubr.msk.f32.gmra.mrb[4].mxu1 %vm207_vm1, %v186_v16 }
 0x23d   :  { %890 = vmatprep.mubr.msk.f32.mxu1 %vm207_vm1, %v188_v21 }
 0x240   :  { %891 = vmatmul.mubr.msk.f32.gmra.mrb[6].mxu1 %vm207_vm1, %v190_v20 }
 0x307   :  { %v883_v42 = vpop.f32.mrb[0].mxu1 }
 0x308   :  { %v306_v44 = vpop.f32.mrb[1].mxu1  ;;  %v362_v45 = vsel %vm354_vm3, %v883_v42, %v346_v40 }
 0x309   :  { %v373_v46 = vsel %vm369_vm4, %v362_v45, -inf  ;;  %v361_v47 = vsel %vm353_vm5, %v306_v44, %v345_v41 }
 0x30a   :  { %374 = vmax.xlane.f32.xlu1 %v373_v46  ;;  %v370_v49 = vsel %vm369_vm4, %v361_v47, -inf }
 0x30b   :  { %371 = vmax.xlane.f32.xlu0 %v370_v49  ;;  %v886_v50 = vpop.f32.mrb[2].mxu1 }
 0x30c   :  { %v316_v52 = vpop.f32.mrb[3].mxu1  ;;  %v364_v57 = vsel %vm356_vm7, %v886_v50, %v348_v48 }
 0x30d   :  { %v363_v53 = vsel %vm355_vm6, %v316_v52, %v347_v43  ;;  %v379_v62 = vsel %vm369_vm4, %v364_v57, -inf }
 0x30e   :  { %v376_v55 = vsel %vm369_vm4, %v363_v53, -inf }
 0x30f   :  { %377 = vmax.xlane.f32.xlu0 %v376_v55  ;;  %v889_v56 = vpop.f32.mrb[4].mxu1 }
 0x310   :  { %v326_v59 = vpop.f32.mrb[5].mxu1  ;;  %v366_v1 = vsel %vm358_vm9, %v889_v56, %v350_v54 }
 0x311   :  { %v365_v60 = vsel %vm357_vm8, %v326_v59, %v349_v51  ;;  %v385_v4 = vsel %vm369_vm4, %v366_v1, -inf }
 0x312   :  { %v382_v63 = vsel %vm369_vm4, %v365_v60, -inf }
 0x313   :  { %380 = vmax.xlane.f32.xlu0 %v379_v62  ;;  %383 = vmax.xlane.f32.xlu1 %v382_v63  ;;  %v892_v0 = vpop.f32.mrb[6].mxu1 }
 0x314   :  { %v336_v2 = vpop.f32.mrb[7].mxu1  ;;  %v368_v6 = vsel %vm360_vm11, %v892_v0, %v352_v61 }
 0x315   :  { %v367_v3 = vsel %vm359_vm10, %v336_v2, %v351_v58  ;;  %v391_v7 = vsel %vm369_vm4, %v368_v6, -inf }
 0x316   :  { %v388_v5 = vsel %vm369_vm4, %v367_v3, -inf }
 0x317   :  { %386 = vmax.xlane.f32.xlu0 %v385_v4  ;;  %389 = vmax.xlane.f32.xlu1 %v388_v5 }
 0x31b   :  { %392 = vmax.xlane.f32.xlu0 %v391_v7 }
 0x328   :  { %1024 = vrot.lane.b32.xlu1 %v1352_v13, %s1227_s2 }
 0x397   :  { %v375_v8 = vpop.xlane.xlu1 %374 }
 0x398   :  { %v395_v9 = vsub.f32 %v362_v45, %v375_v8  ;;  %v372_v10 = vpop.xlane.xlu0 %371 }
 0x399   :  { %v394_v11 = vsub.f32 %v361_v47, %v372_v10 }
 0x39a   :  { %v404_v12 = vmul.f32 1.442695, %v395_v9 }
 0x39b   :  { %v402_v14 = vmul.f32 1.442695, %v394_v11 }
 0x39c   :  { %1043 = vpow2.f32 %v404_v12  ;;  %v378_v15 = vpop.xlane.xlu0 %377 }
 0x39d   :  { %1045 = vpow2.f32 %v402_v14  ;;  %v396_v16 = vsub.f32 %v363_v53, %v378_v15 }
 0x39f   :  { %v406_v17 = vmul.f32 1.442695, %v396_v16 }
 0x3a0   :  { %v381_v20 = vpop.xlane.xlu0 %380  ;;  %v384_v21 = vpop.xlane.xlu1 %383 }
 0x3a1   :  { %1047 = vpow2.f32 %v406_v17  ;;  %v397_v23 = vsub.f32 %v364_v57, %v381_v20  ;;  %v398_v24 = vsub.f32 %v365_v60, %v384_v21 }
 0x3a3   :  { %v408_v25 = vmul.f32 1.442695, %v397_v23  ;;  %v410_v26 = vmul.f32 1.442695, %v398_v24 }
 0x3a4   :  { %v387_v27 = vpop.xlane.xlu0 %386  ;;  %v390_v13 = vpop.xlane.xlu1 %389 }
 0x3a5   :  { %1049 = vpow2.f32 %v408_v25  ;;  %v399_v28 = vsub.f32 %v366_v1, %v387_v27  ;;  %v400_v32 = vsub.f32 %v367_v3, %v390_v13  ;;  %v651_v13 = vld [vmem:[#allocation7] sm:$0xff] }
 0x3a6   :  { %v1044_v29 = vpop.eup %1043  ;;  %1051 = vpow2.f32 %v410_v26 }
 0x3a7   :  { %v1046_v30 = vpop.eup %1045  ;;  %v412_v31 = vmul.f32 1.442695, %v399_v28  ;;  %v421_v33 = vsel %vm369_vm4, %v1044_v29, 0.0  ;;  %v414_v41 = vmul.f32 1.442695, %v400_v32  ;;  %v652_v28 = vld [vmem:[#allocation7 + $0x8] sm:$0xff] }
 0x3a8   :  { %422 = vadd.xlane.f32.xlu0 %v421_v33  ;;  %v393_v34 = vpop.xlane.xlu0 %392  ;;  %v1025_v35 = vpop.permute.xlu1 %1024  ;;  %v418_v36 = vsel %vm369_vm4, %v1046_v30, 0.0 }
 0x3a9   :  { %1053 = vpow2.f32 %v412_v31  ;;  %v401_v37 = vsub.f32 %v368_v6, %v393_v34  ;;  %v1027_v38 = vunpack.i.h.bf16 %v1025_v35  ;;  %v1026_v39 = vunpack.i.l.bf16 %v1025_v35  ;;  %419 = vadd.xlane.f32.xlu1 %v418_v36  ;;  %v654_v31 = vld [vmem:[#allocation7 + $0x18] sm:$0xff] }
 0x3ab   :  { %v1048_v40 = vpop.eup %1047  ;;  %v416_v42 = vmul.f32 1.442695, %v401_v37  ;;  %v964_v43 = vpack.c.bf16 %v1027_v38, %v1026_v39 }
 0x3ac   :  { %v424_v44 = vsel %vm369_vm4, %v1048_v40, 0.0 }
 0x3ad   :  { %1055 = vpow2.f32 %v416_v42  ;;  %425 = vadd.xlane.f32.xlu1 %v424_v44  ;;  %965 = vmatprep.subr.bf16.mxu0 %v964_v43 }
 0x3ae   :  { %967 = vmatpush3.bf16.msra.mxu0 %v964_v43  ;;  %1057 = vpow2.f32 %v414_v41 }
 0x3af   :  { %v1050_v45 = vpop.eup %1049 }
 0x3b0   :  { %v1052_v46 = vpop.eup %1051  ;;  %v427_v47 = vsel %vm369_vm4, %v1050_v45, 0.0 }
 0x3b1   :  { %428 = vadd.xlane.f32.xlu0 %v427_v47  ;;  %v430_v48 = vsel %vm369_vm4, %v1052_v46, 0.0 }
 0x3b2   :  { %431 = vadd.xlane.f32.xlu1 %v430_v48 }
 0x3b3   :  { %v1054_v49 = vpop.eup %1053 }
 0x3b4   :  { %v433_v50 = vsel %vm369_vm4, %v1054_v49, 0.0 }
 0x3b5   :  { %434 = vadd.xlane.f32.xlu0 %v433_v50 }
 0x3b7   :  { %v1056_v51 = vpop.eup %1055 }
 0x3b8   :  { %v439_v52 = vsel %vm369_vm4, %v1056_v51, 0.0  ;;  %v1058_v53 = vpop.eup %1057 }
 0x3b9   :  { %440 = vadd.xlane.f32.xlu0 %v439_v52  ;;  %v436_v54 = vsel %vm369_vm4, %v1058_v53, 0.0 }
 0x3bd   :  { %437 = vadd.xlane.f32.xlu0 %v436_v54 }
 0x3c3   :  { %1034 = vrot.lane.b32.xlu1 %v1355_v18, %s1227_s2 }
 0x3c7   :  { %1039 = vrot.lane.b32.xlu1 %v1361_v22, %s1227_s2 }
 0x3d3   :  { %1029 = vrot.lane.b32.xlu0 %v1357_v19, %s1227_s2 }
 0x435   :  { %v423_v55 = vpop.xlane.xlu0 %422 }
 0x436   :  { %1059 = vrcp.f32 %v423_v55  ;;  %v420_v56 = vpop.xlane.xlu1 %419 }
 0x437   :  { %1061 = vrcp.f32 %v420_v56 }
 0x43a   :  { %v426_v57 = vpop.xlane.xlu1 %425 }
 0x43b   :  { %1063 = vrcp.f32 %v426_v57 }
 0x43e   :  { %v429_v58 = vpop.xlane.xlu0 %428 }
 0x43f   :  { %1065 = vrcp.f32 %v429_v58  ;;  %v432_v59 = vpop.xlane.xlu1 %431 }
 0x440   :  { %v1060_v60 = vpop.eup %1059  ;;  %1067 = vrcp.f32 %v432_v59 }
 0x441   :  { %v1062_v61 = vpop.eup %1061  ;;  %v445_v62 = vmul.f32 %v1060_v60, %v1044_v29  ;;  %v980_v29 = vpack.c.bf16 %v652_v28, %v651_v13 }
 0x442   :  { %v435_v18 = vpop.xlane.xlu0 %434  ;;  %v443_v63 = vmul.f32 %v1062_v61, %v1046_v30  ;;  %v653_v30 = vld [vmem:[#allocation7 + $0x10] sm:$0xff] }
 0x443   :  { %459 = vst.msk [vmem:[#allocation11 + $0x8] sm:$0xff] %vm369_vm4, %v445_v62  ;;  %1069 = vrcp.f32 %v435_v18  ;;  %v1035_v3 = vpop.permute.xlu1 %1034  ;;  %v984_v32 = vpack.c.bf16 %v654_v31, %v653_v30 }
 0x444   :  { %458 = vst.msk [vmem:[#allocation11] sm:$0xff] %vm369_vm4, %v443_v63  ;;  %909 = vmatprep.mubr.msk.f32.mxu0 %vm369_vm4, %v443_v63  ;;  %v1037_v10 = vunpack.i.h.bf16 %v1035_v3  ;;  %v1036_v11 = vunpack.i.l.bf16 %v1035_v3 }
 0x445   :  { %v1064_v19 = vpop.eup %1063 }
 0x446   :  { %v441_v22 = vpop.xlane.xlu0 %440  ;;  %v447_v0 = vmul.f32 %v1064_v19, %v1048_v40  ;;  %v972_v21 = vpack.c.bf16 %v1037_v10, %v1036_v11 }
 0x447   :  { %1071 = vrcp.f32 %v441_v22  ;;  %v1040_v15 = vpop.permute.xlu1 %1039 }
 0x448   :  { %460 = vst.msk [vmem:[#allocation11 + $0x10] sm:$0xff] %vm369_vm4, %v447_v0  ;;  %v1042_v23 = vunpack.i.h.bf16 %v1040_v15  ;;  %v1041_v24 = vunpack.i.l.bf16 %v1040_v15 }
 0x449   :  { %v1066_v1 = vpop.eup %1065 }
 0x44a   :  { %v1068_v2 = vpop.eup %1067  ;;  %v438_v4 = vpop.xlane.xlu0 %437  ;;  %v449_v5 = vmul.f32 %v1066_v1, %v1050_v45  ;;  %v976_v27 = vpack.c.bf16 %v1042_v23, %v1041_v24 }
 0x44b   :  { %1073 = vrcp.f32 %v438_v4  ;;  %v451_v6 = vmul.f32 %v1068_v2, %v1052_v46 }
 0x44c   :  { %461 = vst.msk [vmem:[#allocation11 + $0x18] sm:$0xff] %vm369_vm4, %v449_v5 }
 0x44d   :  { %v1070_v7 = vpop.eup %1069  ;;  %462 = vst.msk [vmem:[#allocation11 + $0x20] sm:$0xff] %vm369_vm4, %v451_v6 }
 0x44e   :  { %v1030_v8 = vpop.permute.xlu0 %1029  ;;  %v453_v9 = vmul.f32 %v1070_v7, %v1054_v49 }
 0x44f   :  { %v1032_v12 = vunpack.i.h.bf16 %v1030_v8  ;;  %v1031_v14 = vunpack.i.l.bf16 %v1030_v8 }
 0x450   :  { %463 = vst.msk [vmem:[#allocation11 + $0x28] sm:$0xff] %vm369_vm4, %v453_v9 }
 0x451   :  { %v1072_v16 = vpop.eup %1071  ;;  %v968_v17 = vpack.c.bf16 %v1032_v12, %v1031_v14 }
 0x452   :  { %v457_v20 = vmul.f32 %v1072_v16, %v1056_v51 }
 0x453   :  { %969 = vmatprep.subr.bf16.mxu0 %v968_v17 }
 0x454   :  { %971 = vmatpush3.bf16.msra.mxu0 %v968_v17  ;;  %465 = vst.msk [vmem:[#allocation11 + $0x38] sm:$0xff] %vm369_vm4, %v457_v20 }
 0x455   :  { %v1074_v25 = vpop.eup %1073  ;;  %973 = vmatprep.subr.bf16.mxu0 %v972_v21 }
 0x456   :  { %v455_v26 = vmul.f32 %v1074_v25, %v1058_v53 }
 0x458   :  { %975 = vmatpush3.bf16.msra.mxu0 %v972_v21  ;;  %464 = vst.msk [vmem:[#allocation11 + $0x30] sm:$0xff] %vm369_vm4, %v455_v26 }
 0x459   :  { %977 = vmatprep.subr.bf16.mxu0 %v976_v27 }
 0x45c   :  { %979 = vmatpush3.bf16.msra.mxu0 %v976_v27 }
 0x45d   :  { %981 = vmatprep.subr.bf16.mxu0 %v980_v29 }
 0x45f   :  { %910 = vmatmul.mubr.msk.f32.vlgmr.msra.gmra.mrb[2].mxu0 %vm369_vm4, %v445_v62 }
 0x460   :  { %912 = vmatprep.mubr.msk.f32.mxu0 %vm369_vm4, %v447_v0  ;;  %983 = vmatpush3.bf16.msra.mxu0 %v980_v29 }
 0x461   :  { %985 = vmatprep.subr.bf16.mxu0 %v984_v32 }
 0x463   :  { %913 = vmatmul.mubr.msk.f32.gmra.mrb[4].mxu0 %vm369_vm4, %v449_v5 }
 0x464   :  { %915 = vmatprep.mubr.msk.f32.mxu0 %vm369_vm4, %v451_v6  ;;  %987 = vmatpush3.bf16.msra.mxu0 %v984_v32 }
 0x467   :  { %916 = vmatmul.mubr.msk.f32.gmra.mrb[6].mxu0 %vm369_vm4, %v453_v9 }
 0x468   :  { %918 = vmatprep.mubr.msk.f32.mxu0 %vm369_vm4, %v455_v26 }
 0x46b   :  { %919 = vmatmul.mubr.msk.f32.gmra.mrb[8].mxu0 %vm369_vm4, %v457_v20 }
 0x532   :  { %v911_v33 = vpop.f32.mrb[2].mxu0 }
 0x533   :  { %v580_v34 = vpop.f32.mrb[3].mxu0 }
 0x536   :  { %v914_v35 = vpop.f32.mrb[4].mxu0 }
 0x537   :  { %623 = vrot.lane.b32.xlu1 %v914_v35, %s1220_s14  ;;  %v590_v36 = vpop.f32.mrb[5].mxu0 }
 0x53a   :  { %v917_v37 = vpop.f32.mrb[6].mxu0 }
 0x53b   :  { %621 = vrot.lane.b32.xlu1 %v590_v36, %s1220_s14  ;;  %v600_v38 = vpop.f32.mrb[7].mxu0 }
 0x53c   :  { %629 = vrot.lane.b32.xlu0 %v600_v38, %s1228_s9 }
 0x53e   :  { %v920_v39 = vpop.f32.mrb[8].mxu0 }
 0x53f   :  { %631 = vrot.lane.b32.xlu1 %v917_v37, %s1228_s9  ;;  %v610_v40 = vpop.f32.mrb[9].mxu0 }
 0x540   :  { %637 = vrot.lane.b32.xlu0 %v610_v40, %s1229_s10 }
 0x543   :  { %639 = vrot.lane.b32.xlu1 %v920_v39, %s1229_s10 }
 0x5a9   :  { %v624_v41 = vpop.permute.xlu1 %623 }
 0x5aa   :  { %v644_v49 = vsel %vm207_vm1, %v911_v33, %v624_v41 }
 0x5ad   :  { %v622_v42 = vpop.permute.xlu1 %621 }
 0x5ae   :  { %v630_v43 = vpop.permute.xlu0 %629  ;;  %v643_v44 = vsel %vm207_vm1, %v580_v34, %v622_v42 }
 0x5af   :  { %v646_v46 = vsel %vm645_vm12, %v643_v44, %v630_v43 }
 0x5b1   :  { %v632_v45 = vpop.permute.xlu1 %631 }
 0x5b2   :  { %v638_v47 = vpop.permute.xlu0 %637  ;;  %v647_v50 = vsel %vm645_vm12, %v644_v49, %v632_v45 }
 0x5b3   :  { %v649_v48 = vsel %vm648_vm13, %v646_v46, %v638_v47 }
 0x5b4   :  { %929 = vmatprep.mubr.msk.f32.mxu0 %vm95_vm0, %v649_v48 }
 0x5b5   :  { %v640_v51 = vpop.permute.xlu1 %639 }
 0x5b6   :  { %v650_v52 = vsel %vm648_vm13, %v647_v50, %v640_v51 }
 0x5b7   :  { %930 = vmatmul.mubr.msk.f32.vlgmr.msra.gmra.mrb[10].mxu0 %vm95_vm0, %v650_v52 }
 0x5b8   :  { %1174 = shalt.err (!%p1171_p8)
}
 0x5b9   :  { %s1175_s27 = scalar_lea.hbm %s1481_s7, 1024 }
 0x5ba   :  { %p1176_p9 = scmp.ne.s32.totalorder %s1481_s7, %s1175_s27  ;;  %p1179_p10 = scmp.lt.u32.totalorder %s1175_s27, %s1481_s7 }
 0x5bc   :  { %p1181_p11 = pnand %p1179_p10, %p1176_p9 }
 0x5be   :  { %1184 = shalt.err (!%p1181_p11)
}
 0x5bf   :  { %768 = dma.vmem_to_hbm [thread:$0]  %s763_s12, 1024, %s1481_s7, [#allocation12], %s1219_s13, %s1219_s13, %s1220_s14  }
 0x5c0   :  { %v807_v53 = vld [vmem:[%s1478_s4] ss:$0 sm:$0xff]  ;;  %s1231_s1 = smov [#allocation10]  }
 0x5c1   :  { %s750_s3 = sshll.u32 %s1231_s1, 4  ;;  %s751_s3 = int_to_ptr.vmem [resolvable:$true] %s750_s3 }
 0x5c2   :  { %s1185_s25 = scalar_lea.vmem %s751_s3, 256  ;;  %p1190_p13 = scmp.lt.s32.totalorder %s751_s3, %s751_s3 }
 0x5c3   :  { %p1186_p12 = scmp.ne.s32.totalorder %s751_s3, %s1185_s25  ;;  %p1191_p0 = scmp.lt.s32.totalorder %s1185_s25, %s1185_s25 }
 0x5c5   :  { %p1192_p1 = por %p1191_p0, %p1190_p13 }
 0x5c7   :  { %p1193_p2 = pnand %p1192_p1, %p1186_p12 }
 0x68a   :  { %v931_v54 = vpop.f32.mrb[10].mxu0 }
 0x68b   :  { %v740_v55 = vadd.f32 %v931_v54, %v807_v53  ;;  %v734_v56 = vpop.f32.mrb[11].mxu0 }
 0x68c   :  { %v735_v57 = vadd.f32 %v807_v53, %v734_v56 }
 0x68d   :  { %744 = vst.msk [vmem:[#allocation10 + $0x8] sm:$0xff] %vm95_vm0, %v740_v55 }
 0x68e   :  { %743 = vst.msk [vmem:[#allocation10] sm:$0xff] %vm95_vm0, %v735_v57 }
 0x68f   :  { %1196 = shalt.err (!%p1193_p2)
}
 0x690   :  { %s1197_s5 = scalar_lea.hbm %s1480_s6, 256 }
 0x691   :  { %p1198_p3 = scmp.ne.s32.totalorder %s1480_s6, %s1197_s5  ;;  %p1201_p4 = scmp.lt.u32.totalorder %s1197_s5, %s1480_s6 }
 0x693   :  { %p1203_p5 = pnand %p1201_p4, %p1198_p3 }
 0x695   :  { %1206 = shalt.err (!%p1203_p5)
}
 0x696   :  { %756 = dma.vmem_to_hbm [thread:$0]  %s751_s3, 256, %s1480_s6, [#allocation4], %s1219_s13, %s1219_s13, %s1220_s14  }
 0x697   :  { %1213 = dma.done.wait [#allocation4], 256  }
 0x698   :  { %1214 = vsyncadd [#allocation4], 4294967040 }
 0x699   :  { %1215 = dma.done.wait [#allocation12], 1024  }
 0x69a   :  { %1216 = vsyncadd [#allocation12], 4294966272 }
 0x69b   :  { %775 = vsyncpa [#allocation3], 1 }
 0x69c   :  { %776 = vsyncpa [#allocation6], 1 }
 0x69d   :  { %777 = vsyncpa [#allocation9], 1 }
 0x69e   :  { %778 = vsyncpa [#allocation4], 1 }
 0x69f   :  { %779 = vsyncpa [#allocation12], 1 }

</bundles_post_ra>
